<compile_context>
chip_gen: v5e
topology: v5e:2x2
jax: 0.10.0
libtpu: 0.0.40
codegen_flags: <defaults>
</compile_context>

<pallas_src>
import functools

import jax
import jax.numpy as jnp
from jax import lax
from jax.experimental import pallas as pl
from jax.experimental.pallas import tpu as pltpu

_EPS = 1e-6  # nn.CosineSimilarity(dim=-1, eps=1e-06)


def _aux_loss_kernel(bus_ref, metro_ref, taxi_ref,
                     bm_ref, bt_ref, bb_ref, mm_ref, tt_ref,
                     *, n_rows, block_n, blocks_per_split):
    s_idx = pl.program_id(1)   # N-split ("parallel", balances v7x's 2 cores)
    n_idx = pl.program_id(2)   # streaming reduction axis ("arbitrary")

    # Output blocks are resident across the n axis -> use them as accumulators.
    @pl.when(n_idx == 0)
    def _init():
        for r in (bm_ref, bt_ref, bb_ref, mm_ref, tt_ref):
            r[...] = jnp.zeros_like(r)

    # Channel reduction on the MXU: (TN, C) @ (C, 128) ones -> (TN, 128) with
    # every lane holding the row-sum; tiles feed the MXU in their own dtype,
    # accumulation is f32.  (Sum instead of mean: the 1/C cancels in the
    # cosine; the eps clamp is rescaled by C in the JAX epilogue.)
    c = bus_ref.shape[-1]
    ones_c = jnp.ones((c, 128), dtype=bus_ref.dtype)
    sb = jnp.dot(bus_ref[...], ones_c, preferred_element_type=jnp.float32)
    sm = jnp.dot(metro_ref[...], ones_c, preferred_element_type=jnp.float32)
    st = jnp.dot(taxi_ref[...], ones_c, preferred_element_type=jnp.float32)

    def _accum(sb, sm, st):
        bm_ref[...] += jnp.sum(sb * sm, axis=0, keepdims=True)
        bt_ref[...] += jnp.sum(sb * st, axis=0, keepdims=True)
        bb_ref[...] += jnp.sum(sb * sb, axis=0, keepdims=True)
        mm_ref[...] += jnp.sum(sm * sm, axis=0, keepdims=True)
        tt_ref[...] += jnp.sum(st * st, axis=0, keepdims=True)

    # Rows of this step that are real data: i < limit (limit <= 0 for steps
    # that fall entirely past N; their contribution is masked to exactly 0).
    g = s_idx * blocks_per_split + n_idx
    limit = n_rows - g * block_n

    @pl.when(limit >= block_n)          # steady state: no masking cost
    def _full():
        _accum(sb, sm, st)

    @pl.when(limit < block_n)           # ragged tail / empty split step
    def _tail():
        row = lax.broadcasted_iota(jnp.int32, sb.shape, 0)
        valid = row < limit
        zero = jnp.zeros_like(sb)
        _accum(jnp.where(valid, sb, zero),
               jnp.where(valid, sm, zero),
               jnp.where(valid, st, zero))


def _round_up(x, m):
    return (x + m - 1) // m * m


def aux_loss(bus, metro, taxi, *, block_n=None, n_split=None):
    """bus, metro, taxi: (B, N, C). Returns scalar float32 loss (== AuxLoss.forward)."""
    assert bus.shape == metro.shape == taxi.shape
    B, N, C = bus.shape
    itemsize = jnp.dtype(bus.dtype).itemsize

    # N-tile: 3 inputs x 2 pipeline buffers kept under ~16 MiB so that, with
    # in-kernel f32 temporaries, we stay well inside the 32 MiB scoped VMEM we
    # request (also fine on v5e whose scoped default is only 16 MiB).
    budget = 16 * 1024 * 1024
    tn = budget // (3 * 2 * C * itemsize)
    tn = min(tn, 2048, _round_up(N, 8))
    if block_n is not None:
        tn = min(tn, block_n)
    tn = max(8, (tn // 8) * 8)

    n_blocks = pl.cdiv(N, tn)
    if n_split is None:
        # v7x has 2 TensorCores: when B alone can't balance them, split the N
        # reduction as a second "parallel" axis.  Exact (partials summed in the
        # JAX epilogue); harmless on single-core v5e/v6e.
        n_split = 2 if (B % 2 == 1 and n_blocks >= 2) else 1
    bps = pl.cdiv(n_blocks, n_split)
    grid = (B, n_split, bps)

    def in_map(b, s, n):
        # Clamp so even the (rare) fully-out-of-range steps fetch a legal
        # block; the kernel masks their contribution to exactly zero.
        return (b, jnp.minimum(s * bps + n, n_blocks - 1), 0)

    in_spec = pl.BlockSpec((None, tn, C), in_map)
    out_spec = pl.BlockSpec((None, None, 1, 128), lambda b, s, n: (b, s, 0, 0))
    stat_shape = jax.ShapeDtypeStruct((B, n_split, 1, 128), jnp.float32)

    kernel = functools.partial(_aux_loss_kernel, n_rows=N, block_n=tn,
                               blocks_per_split=bps)

    bm, bt, bb, mm, tt = pl.pallas_call(
        kernel,
        out_shape=(stat_shape,) * 5,
        grid_spec=pltpu.PrefetchScalarGridSpec(
            num_scalar_prefetch=0,
            grid=grid,
            in_specs=[in_spec, in_spec, in_spec],
            out_specs=(out_spec,) * 5),
        compiler_params=pltpu.CompilerParams(
            dimension_semantics=("parallel", "parallel", "arbitrary"),
            vmem_limit_bytes=32 * 1024 * 1024),
    )(bus, metro, taxi)

    # Tiny plain-JAX epilogue: combine N-splits, form cosines, mean over B.
    def stat(o):                       # (B, n_split, 1, 128) -> (B,)
        return o[:, :, 0, 0].sum(axis=1)

    dot_bm, dot_bt, nb2, nm2, nt2 = map(stat, (bm, bt, bb, mm, tt))
    # We accumulated channel *sums*; torch clamps the norms of the channel
    # *means* at eps, i.e. clamp the sum-vector norms at C * eps.
    eps2 = jnp.float32((C * _EPS) ** 2)
    inv_nb = lax.rsqrt(jnp.maximum(nb2, eps2))
    inv_nm = lax.rsqrt(jnp.maximum(nm2, eps2))
    inv_nt = lax.rsqrt(jnp.maximum(nt2, eps2))
    return (jnp.mean(1.0 - dot_bm * inv_nb * inv_nm) +
            jnp.mean(1.0 - dot_bt * inv_nb * inv_nt))


def _aux_loss_ref(bus, metro, taxi):
    sb = jnp.mean(bus.astype(jnp.float32), axis=-1)
    sm = jnp.mean(metro.astype(jnp.float32), axis=-1)
    st = jnp.mean(taxi.astype(jnp.float32), axis=-1)

    def cos(x, y):
        nx = jnp.maximum(jnp.linalg.norm(x, axis=-1), _EPS)
        ny = jnp.maximum(jnp.linalg.norm(y, axis=-1), _EPS)
        return jnp.sum(x * y, axis=-1) / (nx * ny)

    return jnp.mean(1.0 - cos(sb, sm)) + jnp.mean(1.0 - cos(sb, st))


if __name__ == "__main__":
    key = jax.random.PRNGKey(0)
    ks = jax.random.split(key, 9)

    # Case 1: small shape consistent with the module (B, N, C).
    B, N, C = 2, 8, 32
    bus = jax.random.normal(ks[0], (B, N, C), dtype=jnp.float32)
    metro = jax.random.normal(ks[1], (B, N, C), dtype=jnp.float32)
    taxi = jax.random.normal(ks[2], (B, N, C), dtype=jnp.float32)
    loss = aux_loss(bus, metro, taxi)
    jax.block_until_ready(loss)
    ref = _aux_loss_ref(bus, metro, taxi)
    assert jnp.allclose(loss, ref, atol=1e-4, rtol=1e-4), (loss, ref)

    # Case 2: multiple N tiles, ragged tail (40 % 16 != 0), odd batch -> the
    # reduction is split across a second parallel axis and recombined exactly.
    B2, N2, C2 = 1, 40, 128
    bus2 = jax.random.normal(ks[3], (B2, N2, C2), dtype=jnp.float32)
    metro2 = jax.random.normal(ks[4], (B2, N2, C2), dtype=jnp.float32)
    taxi2 = jax.random.normal(ks[5], (B2, N2, C2), dtype=jnp.float32)
    loss2 = aux_loss(bus2, metro2, taxi2, block_n=16)
    jax.block_until_ready(loss2)
    ref2 = _aux_loss_ref(bus2, metro2, taxi2)
    assert jnp.allclose(loss2, ref2, atol=1e-4, rtol=1e-4), (loss2, ref2)

    # Case 3: bf16 inputs feed the MXU natively (no full-tile casts) and also
    # exercise an empty (fully masked) split step.
    B3, N3, C3 = 3, 24, 64
    bus3 = jax.random.normal(ks[6], (B3, N3, C3)).astype(jnp.bfloat16)
    metro3 = jax.random.normal(ks[7], (B3, N3, C3)).astype(jnp.bfloat16)
    taxi3 = jax.random.normal(ks[8], (B3, N3, C3)).astype(jnp.bfloat16)
    loss3 = aux_loss(bus3, metro3, taxi3, block_n=8)
    jax.block_until_ready(loss3)
    ref3 = _aux_loss_ref(bus3, metro3, taxi3)
    assert jnp.allclose(loss3, ref3, atol=1e-3, rtol=1e-3), (loss3, ref3)

    print("KERNEL_OK")
</pallas_src>

<mosaic_0001>
module attributes {stable_mosaic.version = 11 : i64} {
  func.func @_aux_loss_kernel(%arg0: i32, %arg1: i32, %arg2: i32, %arg3: memref<1x8x32xf32, #tpu.memory_space<vmem>>, %arg4: memref<1x8x32xf32, #tpu.memory_space<vmem>>, %arg5: memref<1x8x32xf32, #tpu.memory_space<vmem>>, %arg6: memref<1x1x1x128xf32, #tpu.memory_space<vmem>>, %arg7: memref<1x1x1x128xf32, #tpu.memory_space<vmem>>, %arg8: memref<1x1x1x128xf32, #tpu.memory_space<vmem>>, %arg9: memref<1x1x1x128xf32, #tpu.memory_space<vmem>>, %arg10: memref<1x1x1x128xf32, #tpu.memory_space<vmem>>) attributes {dimension_semantics = [#tpu.dimension_semantics<parallel>, #tpu.dimension_semantics<parallel>, #tpu.dimension_semantics<arbitrary>], iteration_bounds = array<i64: 2, 1, 1>, scalar_prefetch = 0 : i64, scratch_operands = 0 : i64, tpu.core_type = #tpu.core_type<tc>, window_params = [{transform_indices = @transform_0, window_bounds = array<i64: 1, 8, 32>}, {transform_indices = @transform_1, window_bounds = array<i64: 1, 8, 32>}, {transform_indices = @transform_2, window_bounds = array<i64: 1, 8, 32>}, {transform_indices = @transform_3, window_bounds = array<i64: 1, 1, 1, 128>}, {transform_indices = @transform_4, window_bounds = array<i64: 1, 1, 1, 128>}, {transform_indices = @transform_5, window_bounds = array<i64: 1, 1, 1, 128>}, {transform_indices = @transform_6, window_bounds = array<i64: 1, 1, 1, 128>}, {transform_indices = @transform_7, window_bounds = array<i64: 1, 1, 1, 128>}]} {
    %c0_i32 = arith.constant 0 : i32
    %0 = arith.cmpi eq, %arg2, %c0_i32 : i32
    %1 = arith.extui %0 : i1 to i32
    %c0_i32_0 = arith.constant 0 : i32
    %2 = arith.cmpi ne, %1, %c0_i32_0 : i32
    scf.if %2 {
      %cst_17 = arith.constant 0.000000e+00 : f32
      %23 = vector.broadcast %cst_17 : f32 to vector<1x128xf32>
      %c0_18 = arith.constant 0 : index
      %c0_19 = arith.constant 0 : index
      %c0_20 = arith.constant 0 : index
      %c0_21 = arith.constant 0 : index
      %24 = vector.load %arg6[%c0_18, %c0_19, %c0_20, %c0_21] : memref<1x1x1x128xf32, #tpu.memory_space<vmem>>, vector<1x1x1x128xf32>
      %25 = vector.shape_cast %24 : vector<1x1x1x128xf32> to vector<1x128xf32>
      %26 = vector.shape_cast %23 : vector<1x128xf32> to vector<1x1x1x128xf32>
      tpu.vector_store %arg6[%c0_18, %c0_19, %c0_20, %c0_21], %26 {strides = array<i32>} : memref<1x1x1x128xf32, #tpu.memory_space<vmem>>, vector<1x1x1x128xf32>,
      %cst_22 = arith.constant 0.000000e+00 : f32
      %27 = vector.broadcast %cst_22 : f32 to vector<1x128xf32>
      %c0_23 = arith.constant 0 : index
      %c0_24 = arith.constant 0 : index
      %c0_25 = arith.constant 0 : index
      %c0_26 = arith.constant 0 : index
      %28 = vector.load %arg7[%c0_23, %c0_24, %c0_25, %c0_26] : memref<1x1x1x128xf32, #tpu.memory_space<vmem>>, vector<1x1x1x128xf32>
      %29 = vector.shape_cast %28 : vector<1x1x1x128xf32> to vector<1x128xf32>
      %30 = vector.shape_cast %27 : vector<1x128xf32> to vector<1x1x1x128xf32>
      tpu.vector_store %arg7[%c0_23, %c0_24, %c0_25, %c0_26], %30 {strides = array<i32>} : memref<1x1x1x128xf32, #tpu.memory_space<vmem>>, vector<1x1x1x128xf32>,
      %cst_27 = arith.constant 0.000000e+00 : f32
      %31 = vector.broadcast %cst_27 : f32 to vector<1x128xf32>
      %c0_28 = arith.constant 0 : index
      %c0_29 = arith.constant 0 : index
      %c0_30 = arith.constant 0 : index
      %c0_31 = arith.constant 0 : index
      %32 = vector.load %arg8[%c0_28, %c0_29, %c0_30, %c0_31] : memref<1x1x1x128xf32, #tpu.memory_space<vmem>>, vector<1x1x1x128xf32>
      %33 = vector.shape_cast %32 : vector<1x1x1x128xf32> to vector<1x128xf32>
      %34 = vector.shape_cast %31 : vector<1x128xf32> to vector<1x1x1x128xf32>
      tpu.vector_store %arg8[%c0_28, %c0_29, %c0_30, %c0_31], %34 {strides = array<i32>} : memref<1x1x1x128xf32, #tpu.memory_space<vmem>>, vector<1x1x1x128xf32>,
      %cst_32 = arith.constant 0.000000e+00 : f32
      %35 = vector.broadcast %cst_32 : f32 to vector<1x128xf32>
      %c0_33 = arith.constant 0 : index
      %c0_34 = arith.constant 0 : index
      %c0_35 = arith.constant 0 : index
      %c0_36 = arith.constant 0 : index
      %36 = vector.load %arg9[%c0_33, %c0_34, %c0_35, %c0_36] : memref<1x1x1x128xf32, #tpu.memory_space<vmem>>, vector<1x1x1x128xf32>
      %37 = vector.shape_cast %36 : vector<1x1x1x128xf32> to vector<1x128xf32>
      %38 = vector.shape_cast %35 : vector<1x128xf32> to vector<1x1x1x128xf32>
      tpu.vector_store %arg9[%c0_33, %c0_34, %c0_35, %c0_36], %38 {strides = array<i32>} : memref<1x1x1x128xf32, #tpu.memory_space<vmem>>, vector<1x1x1x128xf32>,
      %cst_37 = arith.constant 0.000000e+00 : f32
      %39 = vector.broadcast %cst_37 : f32 to vector<1x128xf32>
      %c0_38 = arith.constant 0 : index
      %c0_39 = arith.constant 0 : index
      %c0_40 = arith.constant 0 : index
      %c0_41 = arith.constant 0 : index
      %40 = vector.load %arg10[%c0_38, %c0_39, %c0_40, %c0_41] : memref<1x1x1x128xf32, #tpu.memory_space<vmem>>, vector<1x1x1x128xf32>
      %41 = vector.shape_cast %40 : vector<1x1x1x128xf32> to vector<1x128xf32>
      %42 = vector.shape_cast %39 : vector<1x128xf32> to vector<1x1x1x128xf32>
      tpu.vector_store %arg10[%c0_38, %c0_39, %c0_40, %c0_41], %42 {strides = array<i32>} : memref<1x1x1x128xf32, #tpu.memory_space<vmem>>, vector<1x1x1x128xf32>,
    } else {
    }
    %cst = arith.constant 1.000000e+00 : f32
    %3 = vector.broadcast %cst : f32 to vector<32x128xf32>
    %c0 = arith.constant 0 : index
    %c0_1 = arith.constant 0 : index
    %c0_2 = arith.constant 0 : index
    %4 = vector.load %arg3[%c0, %c0_1, %c0_2] : memref<1x8x32xf32, #tpu.memory_space<vmem>>, vector<1x8x32xf32>
    %5 = vector.shape_cast %4 : vector<1x8x32xf32> to vector<8x32xf32>
    %cst_3 = arith.constant dense<0.000000e+00> : vector<8x128xf32>
    %6 = tpu.matmul %5, %3, %cst_3 {dimension_numbers = #tpu.dot_dimension_numbers<[1], [0], [0], [1], [0, 0, 1, 1], [], []>} : vector<8x32xf32>, vector<32x128xf32>, vector<8x128xf32> -> vector<8x128xf32>
    %c0_4 = arith.constant 0 : index
    %c0_5 = arith.constant 0 : index
    %c0_6 = arith.constant 0 : index
    %7 = vector.load %arg4[%c0_4, %c0_5, %c0_6] : memref<1x8x32xf32, #tpu.memory_space<vmem>>, vector<1x8x32xf32>
    %8 = vector.shape_cast %7 : vector<1x8x32xf32> to vector<8x32xf32>
    %cst_7 = arith.constant dense<0.000000e+00> : vector<8x128xf32>
    %9 = tpu.matmul %8, %3, %cst_7 {dimension_numbers = #tpu.dot_dimension_numbers<[1], [0], [0], [1], [0, 0, 1, 1], [], []>} : vector<8x32xf32>, vector<32x128xf32>, vector<8x128xf32> -> vector<8x128xf32>
    %c0_8 = arith.constant 0 : index
    %c0_9 = arith.constant 0 : index
    %c0_10 = arith.constant 0 : index
    %10 = vector.load %arg5[%c0_8, %c0_9, %c0_10] : memref<1x8x32xf32, #tpu.memory_space<vmem>>, vector<1x8x32xf32>
    %11 = vector.shape_cast %10 : vector<1x8x32xf32> to vector<8x32xf32>
    %cst_11 = arith.constant dense<0.000000e+00> : vector<8x128xf32>
    %12 = tpu.matmul %11, %3, %cst_11 {dimension_numbers = #tpu.dot_dimension_numbers<[1], [0], [0], [1], [0, 0, 1, 1], [], []>} : vector<8x32xf32>, vector<32x128xf32>, vector<8x128xf32> -> vector<8x128xf32>
    %c1_i32 = arith.constant 1 : i32
    %13 = arith.muli %arg1, %c1_i32 : i32
    %14 = arith.addi %13, %arg2 : i32
    %c8_i32 = arith.constant 8 : i32
    %15 = arith.muli %14, %c8_i32 : i32
    %c8_i32_12 = arith.constant 8 : i32
    %16 = arith.subi %c8_i32_12, %15 : i32
    %c8_i32_13 = arith.constant 8 : i32
    %17 = arith.cmpi sge, %16, %c8_i32_13 : i32
    %18 = arith.extui %17 : i1 to i32
    %c0_i32_14 = arith.constant 0 : i32
    %19 = arith.cmpi ne, %18, %c0_i32_14 : i32
    scf.if %19 {
      %c0_17 = arith.constant 0 : index
      %c0_18 = arith.constant 0 : index
      %c0_19 = arith.constant 0 : index
      %c0_20 = arith.constant 0 : index
      %23 = vector.load %arg6[%c0_17, %c0_18, %c0_19, %c0_20] : memref<1x1x1x128xf32, #tpu.memory_space<vmem>>, vector<1x1x1x128xf32>
      %24 = vector.shape_cast %23 : vector<1x1x1x128xf32> to vector<1x128xf32>
      %25 = arith.mulf %6, %9 : vector<8x128xf32>
      %cst_21 = arith.constant dense<0.000000e+00> : vector<128xf32>
      %26 = vector.multi_reduction <add>, %25, %cst_21 [0] : vector<8x128xf32> to vector<128xf32>
      %27 = vector.shape_cast %26 : vector<128xf32> to vector<1x128xf32>
      %28 = arith.addf %24, %27 : vector<1x128xf32>
      %c0_22 = arith.constant 0 : index
      %c0_23 = arith.constant 0 : index
      %c0_24 = arith.constant 0 : index
      %c0_25 = arith.constant 0 : index
      %29 = vector.load %arg6[%c0_22, %c0_23, %c0_24, %c0_25] : memref<1x1x1x128xf32, #tpu.memory_space<vmem>>, vector<1x1x1x128xf32>
      %30 = vector.shape_cast %29 : vector<1x1x1x128xf32> to vector<1x128xf32>
      %31 = vector.shape_cast %28 : vector<1x128xf32> to vector<1x1x1x128xf32>
      tpu.vector_store %arg6[%c0_22, %c0_23, %c0_24, %c0_25], %31 {strides = array<i32>} : memref<1x1x1x128xf32, #tpu.memory_space<vmem>>, vector<1x1x1x128xf32>,
      %c0_26 = arith.constant 0 : index
      %c0_27 = arith.constant 0 : index
      %c0_28 = arith.constant 0 : index
      %c0_29 = arith.constant 0 : index
      %32 = vector.load %arg7[%c0_26, %c0_27, %c0_28, %c0_29] : memref<1x1x1x128xf32, #tpu.memory_space<vmem>>, vector<1x1x1x128xf32>
      %33 = vector.shape_cast %32 : vector<1x1x1x128xf32> to vector<1x128xf32>
      %34 = arith.mulf %6, %12 : vector<8x128xf32>
      %cst_30 = arith.constant dense<0.000000e+00> : vector<128xf32>
      %35 = vector.multi_reduction <add>, %34, %cst_30 [0] : vector<8x128xf32> to vector<128xf32>
      %36 = vector.shape_cast %35 : vector<128xf32> to vector<1x128xf32>
      %37 = arith.addf %33, %36 : vector<1x128xf32>
      %c0_31 = arith.constant 0 : index
      %c0_32 = arith.constant 0 : index
      %c0_33 = arith.constant 0 : index
      %c0_34 = arith.constant 0 : index
      %38 = vector.load %arg7[%c0_31, %c0_32, %c0_33, %c0_34] : memref<1x1x1x128xf32, #tpu.memory_space<vmem>>, vector<1x1x1x128xf32>
      %39 = vector.shape_cast %38 : vector<1x1x1x128xf32> to vector<1x128xf32>
      %40 = vector.shape_cast %37 : vector<1x128xf32> to vector<1x1x1x128xf32>
      tpu.vector_store %arg7[%c0_31, %c0_32, %c0_33, %c0_34], %40 {strides = array<i32>} : memref<1x1x1x128xf32, #tpu.memory_space<vmem>>, vector<1x1x1x128xf32>,
      %c0_35 = arith.constant 0 : index
      %c0_36 = arith.constant 0 : index
      %c0_37 = arith.constant 0 : index
      %c0_38 = arith.constant 0 : index
      %41 = vector.load %arg8[%c0_35, %c0_36, %c0_37, %c0_38] : memref<1x1x1x128xf32, #tpu.memory_space<vmem>>, vector<1x1x1x128xf32>
      %42 = vector.shape_cast %41 : vector<1x1x1x128xf32> to vector<1x128xf32>
      %43 = arith.mulf %6, %6 : vector<8x128xf32>
      %cst_39 = arith.constant dense<0.000000e+00> : vector<128xf32>
      %44 = vector.multi_reduction <add>, %43, %cst_39 [0] : vector<8x128xf32> to vector<128xf32>
      %45 = vector.shape_cast %44 : vector<128xf32> to vector<1x128xf32>
      %46 = arith.addf %42, %45 : vector<1x128xf32>
      %c0_40 = arith.constant 0 : index
      %c0_41 = arith.constant 0 : index
      %c0_42 = arith.constant 0 : index
      %c0_43 = arith.constant 0 : index
      %47 = vector.load %arg8[%c0_40, %c0_41, %c0_42, %c0_43] : memref<1x1x1x128xf32, #tpu.memory_space<vmem>>, vector<1x1x1x128xf32>
      %48 = vector.shape_cast %47 : vector<1x1x1x128xf32> to vector<1x128xf32>
      %49 = vector.shape_cast %46 : vector<1x128xf32> to vector<1x1x1x128xf32>
      tpu.vector_store %arg8[%c0_40, %c0_41, %c0_42, %c0_43], %49 {strides = array<i32>} : memref<1x1x1x128xf32, #tpu.memory_space<vmem>>, vector<1x1x1x128xf32>,
      %c0_44 = arith.constant 0 : index
      %c0_45 = arith.constant 0 : index
      %c0_46 = arith.constant 0 : index
      %c0_47 = arith.constant 0 : index
      %50 = vector.load %arg9[%c0_44, %c0_45, %c0_46, %c0_47] : memref<1x1x1x128xf32, #tpu.memory_space<vmem>>, vector<1x1x1x128xf32>
      %51 = vector.shape_cast %50 : vector<1x1x1x128xf32> to vector<1x128xf32>
      %52 = arith.mulf %9, %9 : vector<8x128xf32>
      %cst_48 = arith.constant dense<0.000000e+00> : vector<128xf32>
      %53 = vector.multi_reduction <add>, %52, %cst_48 [0] : vector<8x128xf32> to vector<128xf32>
      %54 = vector.shape_cast %53 : vector<128xf32> to vector<1x128xf32>
      %55 = arith.addf %51, %54 : vector<1x128xf32>
      %c0_49 = arith.constant 0 : index
      %c0_50 = arith.constant 0 : index
      %c0_51 = arith.constant 0 : index
      %c0_52 = arith.constant 0 : index
      %56 = vector.load %arg9[%c0_49, %c0_50, %c0_51, %c0_52] : memref<1x1x1x128xf32, #tpu.memory_space<vmem>>, vector<1x1x1x128xf32>
      %57 = vector.shape_cast %56 : vector<1x1x1x128xf32> to vector<1x128xf32>
      %58 = vector.shape_cast %55 : vector<1x128xf32> to vector<1x1x1x128xf32>
      tpu.vector_store %arg9[%c0_49, %c0_50, %c0_51, %c0_52], %58 {strides = array<i32>} : memref<1x1x1x128xf32, #tpu.memory_space<vmem>>, vector<1x1x1x128xf32>,
      %c0_53 = arith.constant 0 : index
      %c0_54 = arith.constant 0 : index
      %c0_55 = arith.constant 0 : index
      %c0_56 = arith.constant 0 : index
      %59 = vector.load %arg10[%c0_53, %c0_54, %c0_55, %c0_56] : memref<1x1x1x128xf32, #tpu.memory_space<vmem>>, vector<1x1x1x128xf32>
      %60 = vector.shape_cast %59 : vector<1x1x1x128xf32> to vector<1x128xf32>
      %61 = arith.mulf %12, %12 : vector<8x128xf32>
      %cst_57 = arith.constant dense<0.000000e+00> : vector<128xf32>
      %62 = vector.multi_reduction <add>, %61, %cst_57 [0] : vector<8x128xf32> to vector<128xf32>
      %63 = vector.shape_cast %62 : vector<128xf32> to vector<1x128xf32>
      %64 = arith.addf %60, %63 : vector<1x128xf32>
      %c0_58 = arith.constant 0 : index
      %c0_59 = arith.constant 0 : index
      %c0_60 = arith.constant 0 : index
      %c0_61 = arith.constant 0 : index
      %65 = vector.load %arg10[%c0_58, %c0_59, %c0_60, %c0_61] : memref<1x1x1x128xf32, #tpu.memory_space<vmem>>, vector<1x1x1x128xf32>
      %66 = vector.shape_cast %65 : vector<1x1x1x128xf32> to vector<1x128xf32>
      %67 = vector.shape_cast %64 : vector<1x128xf32> to vector<1x1x1x128xf32>
      tpu.vector_store %arg10[%c0_58, %c0_59, %c0_60, %c0_61], %67 {strides = array<i32>} : memref<1x1x1x128xf32, #tpu.memory_space<vmem>>, vector<1x1x1x128xf32>,
    } else {
    }
    %c8_i32_15 = arith.constant 8 : i32
    %20 = arith.cmpi slt, %16, %c8_i32_15 : i32
    %21 = arith.extui %20 : i1 to i32
    %c0_i32_16 = arith.constant 0 : i32
    %22 = arith.cmpi ne, %21, %c0_i32_16 : i32
    scf.if %22 {
      %23 = tpu.iota {dimensions = array<i32: 0>} : vector<8x128xi32>
      %24 = vector.broadcast %16 : i32 to vector<8x128xi32>
      %25 = arith.cmpi slt, %23, %24 : vector<8x128xi32>
      %cst_17 = arith.constant 0.000000e+00 : f32
      %26 = vector.broadcast %cst_17 : f32 to vector<8x128xf32>
      %27 = arith.select %25, %6, %26 : vector<8x128xi1>, vector<8x128xf32>
      %28 = arith.select %25, %9, %26 : vector<8x128xi1>, vector<8x128xf32>
      %29 = arith.select %25, %12, %26 : vector<8x128xi1>, vector<8x128xf32>
      %c0_18 = arith.constant 0 : index
      %c0_19 = arith.constant 0 : index
      %c0_20 = arith.constant 0 : index
      %c0_21 = arith.constant 0 : index
      %30 = vector.load %arg6[%c0_18, %c0_19, %c0_20, %c0_21] : memref<1x1x1x128xf32, #tpu.memory_space<vmem>>, vector<1x1x1x128xf32>
      %31 = vector.shape_cast %30 : vector<1x1x1x128xf32> to vector<1x128xf32>
      %32 = arith.mulf %27, %28 : vector<8x128xf32>
      %cst_22 = arith.constant dense<0.000000e+00> : vector<128xf32>
      %33 = vector.multi_reduction <add>, %32, %cst_22 [0] : vector<8x128xf32> to vector<128xf32>
      %34 = vector.shape_cast %33 : vector<128xf32> to vector<1x128xf32>
      %35 = arith.addf %31, %34 : vector<1x128xf32>
      %c0_23 = arith.constant 0 : index
      %c0_24 = arith.constant 0 : index
      %c0_25 = arith.constant 0 : index
      %c0_26 = arith.constant 0 : index
      %36 = vector.load %arg6[%c0_23, %c0_24, %c0_25, %c0_26] : memref<1x1x1x128xf32, #tpu.memory_space<vmem>>, vector<1x1x1x128xf32>
      %37 = vector.shape_cast %36 : vector<1x1x1x128xf32> to vector<1x128xf32>
      %38 = vector.shape_cast %35 : vector<1x128xf32> to vector<1x1x1x128xf32>
      tpu.vector_store %arg6[%c0_23, %c0_24, %c0_25, %c0_26], %38 {strides = array<i32>} : memref<1x1x1x128xf32, #tpu.memory_space<vmem>>, vector<1x1x1x128xf32>,
      %c0_27 = arith.constant 0 : index
      %c0_28 = arith.constant 0 : index
      %c0_29 = arith.constant 0 : index
      %c0_30 = arith.constant 0 : index
      %39 = vector.load %arg7[%c0_27, %c0_28, %c0_29, %c0_30] : memref<1x1x1x128xf32, #tpu.memory_space<vmem>>, vector<1x1x1x128xf32>
      %40 = vector.shape_cast %39 : vector<1x1x1x128xf32> to vector<1x128xf32>
      %41 = arith.mulf %27, %29 : vector<8x128xf32>
      %cst_31 = arith.constant dense<0.000000e+00> : vector<128xf32>
      %42 = vector.multi_reduction <add>, %41, %cst_31 [0] : vector<8x128xf32> to vector<128xf32>
      %43 = vector.shape_cast %42 : vector<128xf32> to vector<1x128xf32>
      %44 = arith.addf %40, %43 : vector<1x128xf32>
      %c0_32 = arith.constant 0 : index
      %c0_33 = arith.constant 0 : index
      %c0_34 = arith.constant 0 : index
      %c0_35 = arith.constant 0 : index
      %45 = vector.load %arg7[%c0_32, %c0_33, %c0_34, %c0_35] : memref<1x1x1x128xf32, #tpu.memory_space<vmem>>, vector<1x1x1x128xf32>
      %46 = vector.shape_cast %45 : vector<1x1x1x128xf32> to vector<1x128xf32>
      %47 = vector.shape_cast %44 : vector<1x128xf32> to vector<1x1x1x128xf32>
      tpu.vector_store %arg7[%c0_32, %c0_33, %c0_34, %c0_35], %47 {strides = array<i32>} : memref<1x1x1x128xf32, #tpu.memory_space<vmem>>, vector<1x1x1x128xf32>,
      %c0_36 = arith.constant 0 : index
      %c0_37 = arith.constant 0 : index
      %c0_38 = arith.constant 0 : index
      %c0_39 = arith.constant 0 : index
      %48 = vector.load %arg8[%c0_36, %c0_37, %c0_38, %c0_39] : memref<1x1x1x128xf32, #tpu.memory_space<vmem>>, vector<1x1x1x128xf32>
      %49 = vector.shape_cast %48 : vector<1x1x1x128xf32> to vector<1x128xf32>
      %50 = arith.mulf %27, %27 : vector<8x128xf32>
      %cst_40 = arith.constant dense<0.000000e+00> : vector<128xf32>
      %51 = vector.multi_reduction <add>, %50, %cst_40 [0] : vector<8x128xf32> to vector<128xf32>
      %52 = vector.shape_cast %51 : vector<128xf32> to vector<1x128xf32>
      %53 = arith.addf %49, %52 : vector<1x128xf32>
      %c0_41 = arith.constant 0 : index
      %c0_42 = arith.constant 0 : index
      %c0_43 = arith.constant 0 : index
      %c0_44 = arith.constant 0 : index
      %54 = vector.load %arg8[%c0_41, %c0_42, %c0_43, %c0_44] : memref<1x1x1x128xf32, #tpu.memory_space<vmem>>, vector<1x1x1x128xf32>
      %55 = vector.shape_cast %54 : vector<1x1x1x128xf32> to vector<1x128xf32>
      %56 = vector.shape_cast %53 : vector<1x128xf32> to vector<1x1x1x128xf32>
      tpu.vector_store %arg8[%c0_41, %c0_42, %c0_43, %c0_44], %56 {strides = array<i32>} : memref<1x1x1x128xf32, #tpu.memory_space<vmem>>, vector<1x1x1x128xf32>,
      %c0_45 = arith.constant 0 : index
      %c0_46 = arith.constant 0 : index
      %c0_47 = arith.constant 0 : index
      %c0_48 = arith.constant 0 : index
      %57 = vector.load %arg9[%c0_45, %c0_46, %c0_47, %c0_48] : memref<1x1x1x128xf32, #tpu.memory_space<vmem>>, vector<1x1x1x128xf32>
      %58 = vector.shape_cast %57 : vector<1x1x1x128xf32> to vector<1x128xf32>
      %59 = arith.mulf %28, %28 : vector<8x128xf32>
      %cst_49 = arith.constant dense<0.000000e+00> : vector<128xf32>
      %60 = vector.multi_reduction <add>, %59, %cst_49 [0] : vector<8x128xf32> to vector<128xf32>
      %61 = vector.shape_cast %60 : vector<128xf32> to vector<1x128xf32>
      %62 = arith.addf %58, %61 : vector<1x128xf32>
      %c0_50 = arith.constant 0 : index
      %c0_51 = arith.constant 0 : index
      %c0_52 = arith.constant 0 : index
      %c0_53 = arith.constant 0 : index
      %63 = vector.load %arg9[%c0_50, %c0_51, %c0_52, %c0_53] : memref<1x1x1x128xf32, #tpu.memory_space<vmem>>, vector<1x1x1x128xf32>
      %64 = vector.shape_cast %63 : vector<1x1x1x128xf32> to vector<1x128xf32>
      %65 = vector.shape_cast %62 : vector<1x128xf32> to vector<1x1x1x128xf32>
      tpu.vector_store %arg9[%c0_50, %c0_51, %c0_52, %c0_53], %65 {strides = array<i32>} : memref<1x1x1x128xf32, #tpu.memory_space<vmem>>, vector<1x1x1x128xf32>,
      %c0_54 = arith.constant 0 : index
      %c0_55 = arith.constant 0 : index
      %c0_56 = arith.constant 0 : index
      %c0_57 = arith.constant 0 : index
      %66 = vector.load %arg10[%c0_54, %c0_55, %c0_56, %c0_57] : memref<1x1x1x128xf32, #tpu.memory_space<vmem>>, vector<1x1x1x128xf32>
      %67 = vector.shape_cast %66 : vector<1x1x1x128xf32> to vector<1x128xf32>
      %68 = arith.mulf %29, %29 : vector<8x128xf32>
      %cst_58 = arith.constant dense<0.000000e+00> : vector<128xf32>
      %69 = vector.multi_reduction <add>, %68, %cst_58 [0] : vector<8x128xf32> to vector<128xf32>
      %70 = vector.shape_cast %69 : vector<128xf32> to vector<1x128xf32>
      %71 = arith.addf %67, %70 : vector<1x128xf32>
      %c0_59 = arith.constant 0 : index
      %c0_60 = arith.constant 0 : index
      %c0_61 = arith.constant 0 : index
      %c0_62 = arith.constant 0 : index
      %72 = vector.load %arg10[%c0_59, %c0_60, %c0_61, %c0_62] : memref<1x1x1x128xf32, #tpu.memory_space<vmem>>, vector<1x1x1x128xf32>
      %73 = vector.shape_cast %72 : vector<1x1x1x128xf32> to vector<1x128xf32>
      %74 = vector.shape_cast %71 : vector<1x128xf32> to vector<1x1x1x128xf32>
      tpu.vector_store %arg10[%c0_59, %c0_60, %c0_61, %c0_62], %74 {strides = array<i32>} : memref<1x1x1x128xf32, #tpu.memory_space<vmem>>, vector<1x1x1x128xf32>,
    } else {
    }
    return
  }
  func.func @transform_0(%arg0: i32, %arg1: i32, %arg2: i32) -> (i32, i32, i32) {
    %c1_i32 = arith.constant 1 : i32
    %0 = arith.muli %arg1, %c1_i32 : i32
    %1 = arith.addi %0, %arg2 : i32
    %c0_i32 = arith.constant 0 : i32
    %2 = arith.minsi %1, %c0_i32 : i32
    %c0_i32_0 = arith.constant 0 : i32
    %c0_i32_1 = arith.constant 0 : i32
    return %arg0, %2, %c0_i32_0 : i32, i32, i32
  }
  func.func @transform_1(%arg0: i32, %arg1: i32, %arg2: i32) -> (i32, i32, i32) {
    %c1_i32 = arith.constant 1 : i32
    %0 = arith.muli %arg1, %c1_i32 : i32
    %1 = arith.addi %0, %arg2 : i32
    %c0_i32 = arith.constant 0 : i32
    %2 = arith.minsi %1, %c0_i32 : i32
    %c0_i32_0 = arith.constant 0 : i32
    %c0_i32_1 = arith.constant 0 : i32
    return %arg0, %2, %c0_i32_0 : i32, i32, i32
  }
  func.func @transform_2(%arg0: i32, %arg1: i32, %arg2: i32) -> (i32, i32, i32) {
    %c1_i32 = arith.constant 1 : i32
    %0 = arith.muli %arg1, %c1_i32 : i32
    %1 = arith.addi %0, %arg2 : i32
    %c0_i32 = arith.constant 0 : i32
    %2 = arith.minsi %1, %c0_i32 : i32
    %c0_i32_0 = arith.constant 0 : i32
    %c0_i32_1 = arith.constant 0 : i32
    return %arg0, %2, %c0_i32_0 : i32, i32, i32
  }
  func.func @transform_3(%arg0: i32, %arg1: i32, %arg2: i32) -> (i32, i32, i32, i32) {
    %c0_i32 = arith.constant 0 : i32
    %c0_i32_0 = arith.constant 0 : i32
    %c0_i32_1 = arith.constant 0 : i32
    return %arg0, %arg1, %c0_i32, %c0_i32_0 : i32, i32, i32, i32
  }
  func.func @transform_4(%arg0: i32, %arg1: i32, %arg2: i32) -> (i32, i32, i32, i32) {
    %c0_i32 = arith.constant 0 : i32
    %c0_i32_0 = arith.constant 0 : i32
    %c0_i32_1 = arith.constant 0 : i32
    return %arg0, %arg1, %c0_i32, %c0_i32_0 : i32, i32, i32, i32
  }
  func.func @transform_5(%arg0: i32, %arg1: i32, %arg2: i32) -> (i32, i32, i32, i32) {
    %c0_i32 = arith.constant 0 : i32
    %c0_i32_0 = arith.constant 0 : i32
    %c0_i32_1 = arith.constant 0 : i32
    return %arg0, %arg1, %c0_i32, %c0_i32_0 : i32, i32, i32, i32
  }
  func.func @transform_6(%arg0: i32, %arg1: i32, %arg2: i32) -> (i32, i32, i32, i32) {
    %c0_i32 = arith.constant 0 : i32
    %c0_i32_0 = arith.constant 0 : i32
    %c0_i32_1 = arith.constant 0 : i32
    return %arg0, %arg1, %c0_i32, %c0_i32_0 : i32, i32, i32, i32
  }
  func.func @transform_7(%arg0: i32, %arg1: i32, %arg2: i32) -> (i32, i32, i32, i32) {
    %c0_i32 = arith.constant 0 : i32
    %c0_i32_0 = arith.constant 0 : i32
    %c0_i32_1 = arith.constant 0 : i32
    return %arg0, %arg1, %c0_i32, %c0_i32_0 : i32, i32, i32, i32
  }
}

</mosaic_0001>

<bundles_post_ra>
// kernel: tpu_custom_call.1
= control target key start
LH: loop header
LB: loop body
LE: loop exit
PB: predicated region body
PF: predicated region fallthrough
CT: control target
= control target key end

     0   :  { %s1754_s0 = inlined_call_operand.hbm [shape: f32[2,8,32], index: 0, kind: input, shape index: {}]   ;;  %s1755_s1 = inlined_call_operand.hbm [shape: f32[2,8,32], index: 1, kind: input, shape index: {}]   ;;  %s1756_s2 = inlined_call_operand.hbm [shape: f32[2,8,32], index: 2, kind: input, shape index: {}]   ;;  %s1757_s3 = inlined_call_operand.hbm [shape: f32[2,1,1,128], index: 3, kind: output, shape index: {0}]   ;;  %s1758_s4 = inlined_call_operand.hbm [shape: f32[2,1,1,128], index: 4, kind: output, shape index: {1}]   ;;  %s1759_s5 = inlined_call_operand.hbm [shape: f32[2,1,1,128], index: 5, kind: output, shape index: {2}]   ;;  %s1760_s6 = inlined_call_operand.hbm [shape: f32[2,1,1,128], index: 6, kind: output, shape index: {3}]   ;;  %s1761_s7 = inlined_call_operand.hbm [shape: f32[2,1,1,128], index: 7, kind: output, shape index: {4}]  }
   0x1   :  { %1772 = sst [smem:[#allocation28_spill]] %s1754_s0 }
   0x2   :  { %1773 = sst [smem:[#allocation29_spill]] %s1755_s1 }
   0x3   :  { %13 = vsyncpa [#allocation3], 0 }
   0x4   :  { %15 = vsyncpa [#allocation3 + $0x1], 0 }
   0x5   :  { %16 = vsyncpa [#allocation6], 0 }
   0x6   :  { %18 = vsyncpa [#allocation6 + $0x1], 0 }
   0x7   :  { %19 = vsyncpa [#allocation4], 0 }
   0x8   :  { %21 = vsyncpa [#allocation4 + $0x1], 0 }
   0x9   :  { %22 = vsyncpa [#allocation10], 0 }
   0xa   :  { %24 = vsyncpa [#allocation10 + $0x1], 0 }
   0xb   :  { %25 = vsyncpa [#allocation13], 0 }
   0xc   :  { %27 = vsyncpa [#allocation13 + $0x1], 0  ;;  %s1448_s24 = smov 0   ;;  %s1450_s25 = smov 0  }
   0xd   :  { %s1452_s26 = smov 0   ;;  %s1454_s27 = smov 0  }
   0xe   :  { %s1456_s28 = smov 0   ;;  %s1458_s29 = smov 0  }
   0xf LB: > { %1774 = sst [smem:[#allocation20_spill]] %s1384_s24  ;;  %s1479_s30 = sadd.s32 4294967295, %s1404_s29   ;;  %s1404_s29 = sphi %s1458_s29, %s33_s29   ;;  %s1400_s28 = sphi %s1456_s28, %s1802_s28   ;;  %s1396_s27 = sphi %s1454_s27, %s1801_s27   ;;  %s1392_s26 = sphi %s1452_s26, %s1800_s26   ;;  %s1388_s25 = sphi %s1450_s25, %s1804_s25   ;;  %s1384_s24 = sphi %s1448_s24, %s1803_s24  }
  0x10   : > { %1775 = sst [smem:[#allocation21_spill]] %s1392_s26  ;;  %s1762_s8 = sadd.s32 4294967294, %s1404_s29  }
  0x11   : > { %1776 = sst [smem:[#allocation22_spill]] %s1400_s28  ;;  %s52_s9 = sadd.s32 1, %s1400_s28 }
  0x12   : > { %1777 = sst [smem:[#allocation23_spill]] %s1404_s29  ;;  %s67_s10 = sadd.s32 1, %s1392_s26 }
  0x13   : > { %p54_p0 = scmp.ge.s32.totalorder %s52_s9, 2  ;;  %p74_p1 = scmp.ne.s32.totalorder %s1392_s26, %s1388_s25 }
  0x14   : > { %p75_p2 = scmp.eq.s32.totalorder %s1404_s29, 0  ;;  %p80_p3 = scmp.ne.s32.totalorder %s1388_s25, %s1384_s24 }
  0x15   : > { %s1806_s9 = smov (%p54_p0, %s52_s9), 0  ;;  %p81_p5 = scmp.eq.s32.totalorder %s1479_s30, 0 }
  0x16   : > { %1778 = sst [smem:[#allocation24_spill]] %s1806_s9  ;;  %p1491_p4 = por %p75_p2, %p74_p1 }
  0x17   : > { %s62_s12 = ssub.s32 %s1400_s28, %s1806_s9  ;;  %p174_p6 = scmp.eq.s32.totalorder %s1479_s30, 1 }
  0x18   : > { %p65_p7 = scmp.eq.s32.totalorder %s62_s12, 0  ;;  %p1499_p8 = por %p81_p5, %p80_p3 }
  0x19   : > { %p1503_p9 = por %p174_p6, %p74_p1  ;;  %p180_p10 = scmp.eq.s32.totalorder %s1762_s8, 1 }
  0x1a   : > { %s1510_s15 = scalar_select %p65_p7, %s1392_s26, %s67_s10  }
  0x1b   : > { %p1512_p11 = por %p180_p10, %p80_p3  ;;  %p998_p12 = scmp.ge.s32.totalorder %s1404_s29, 2 }
  0x1c   : > { %1782 = sst [smem:[#allocation25_spill]] %s1510_s15  ;;  %p1056_p13 = scmp.lt.s32.totalorder %s1404_s29, 2 }
  0x1d   : > { %s1783_s16 = scalar_select %p1512_p11, 1, 0 }
  0x1e   : > { %s312_s17 = sand.u32 1, %s1392_s26   ;;  %s1000_s19 = sshll.u32 %s1400_s28, 3 }
  0x1f   : > { %1784 = sst [smem:[#allocation26_spill]] %s1783_s16  ;;  %s999_s18 = sshll.u32 %s312_s17, 3 }
  0x20   : > { %p1522_p0 = pnand %p1056_p13, %p1491_p4  ;;  %s335_s21 = sand.u32 1, %s1404_s29  }
  0x21   : > { %s1786_s1 = sld [smem:[#allocation29_spill]]  ;;  %s339_s8 = scalar_lea.vmem [#allocation5], %s999_s18 }
  0x22   : > { %s351_s9 = sshll.u32 %s339_s8, 4  ;;  %s336_s15 = scalar_lea.sflag [#allocation6], %s335_s21  ;;  %s352_s9 = int_to_ptr.vmem [resolvable:$true] %s351_s9 }
  0x23   : > { %p1005_p1 = scmp.ge.s32.totalorder %s1404_s29, 1  ;;  %p379_p2 = scmp.lt.s32.totalorder %s1404_s29, 3 }
  0x24   : > { %s1788_s0 = sld [smem:[#allocation28_spill]]  ;;  %s313_s8 = scalar_lea.sflag [#allocation3], %s312_s17 }
  0x25   : > { %p1534_p3 = pnand %p1005_p1, %p379_p2  ;;  %s362_s16 = scalar_lea.vmem [#allocation7], %s999_s18 }
  0x26   : > { %s374_s24 = sshll.u32 %s362_s16, 4  ;;  %s375_s24 = int_to_ptr.vmem [resolvable:$true] %s374_s24 }
  0x27   : > { %s347_s10 = scalar_lea.hbm %s1786_s1, %s1000_s19 }
  0x28   : > { %s349_s12 = sshll.u32 %s347_s10, 4  ;;  %s316_s10 = scalar_lea.vmem [#allocation2], %s999_s18  ;;  %s350_s12 = int_to_ptr.hbm [resolvable:$true] %s349_s12 }
  0x29   : > { %1036 = dma.hbm_to_vmem [thread:$0]  (!%p1522_p0), %s350_s12, 128, %s352_s9, %s336_s15  }
  0x2a   : > { %s324_s22 = scalar_lea.hbm %s1788_s0, %s1000_s19  ;;  %s328_s1 = sshll.u32 %s316_s10, 4  ;;  %s329_s1 = int_to_ptr.vmem [resolvable:$true] %s328_s1 }
  0x2b   : > { %s326_s23 = sshll.u32 %s324_s22, 4  ;;  %s370_s12 = scalar_lea.hbm %s1756_s2, %s1000_s19  ;;  %s327_s23 = int_to_ptr.hbm [resolvable:$true] %s326_s23 }
  0x2c   : > { %1033 = dma.hbm_to_vmem [thread:$0]  (!%p1522_p0), %s327_s23, 128, %s329_s1, %s313_s8  }
  0x2d   : > { %s372_s29 = sshll.u32 %s370_s12, 4  ;;  %383 = sbr.rel (%p1534_p3) target bundleno = 269 (0x10d), region = 32  ;;  %s373_s29 = int_to_ptr.hbm [resolvable:$true] %s372_s29 }
  0x2e   : > { %1039 = dma.hbm_to_vmem [thread:$0]  (!%p1522_p0), %s373_s29, 128, %s375_s24, %s336_s15  }
  0x32   : > { %s1551_s26 = sand.u32 1, %s1388_s25  }
  0x33   : > { %s1554_s1 = sshll.u32 %s1551_s26, 3  ;;  %s386_s28 = scalar_lea.sflag [#allocation3], %s1551_s26 }
  0x34   : > { %s389_s17 = scalar_lea.vmem [#allocation2], %s1554_s1 }
  0x35   : > { %1363 = dma.done.wait (%p1499_p8), %s386_s28, 128  }
  0x36   : > { %1365 = vsyncadd (%p1499_p8), %s386_s28, 4294967168  ;;  %s1563_s24 = sand.u32 1, %s1479_s30   ;;  %s399_s15 = scalar_lea.vmem [#allocation5], %s1554_s1 }
  0x37   : > { %s396_s29 = scalar_lea.sflag [#allocation6], %s1563_s24 }
  0x38   : > { %1367 = dma.done.wait (%p1499_p8), %s396_s29, 256  }
  0x39   : > { %1369 = vsyncadd (%p1499_p8), %s396_s29, 4294967040  ;;  %v1406_v0 = vmov 1.0   ;;  %s1572_s16 = scalar_lea.vmem [#allocation11], %s1551_s26  ;;  %v1407_v1 = vmov 0.0   ;;  %vm485_vm0 = vcmask 261120   ;;  %v484_v2 = vld [vmem:[%s389_s17] sm:$0xff]  ;;  %s715_s23 = scalar_lea.hbm %s1758_s4, %s1396_s27 }
  0x3a   : > { %501 = vmatpush.msra.mxu0 %v1406_v0  ;;  %525 = vmatpush.msra.mxu1 %v1406_v0  ;;  %481 = vst [vmem:[%s1572_s16] sm:$0x1] %v1407_v1  ;;  %v509_v3 = vld [vmem:[%s399_s15] sm:$0xff]  ;;  %s409_s30 = scalar_lea.vmem [#allocation7], %s1554_s1  ;;  %s1577_s13 = scalar_lea.vmem [#allocation8], %s1551_s26 }
  0x3b   : > { %549 = vmatpush.msra.mxu2 %v1406_v0  ;;  %v533_v4 = vld [vmem:[%s409_s30] sm:$0xff]  ;;  %479 = vst [vmem:[%s1577_s13] sm:$0x1] %v1407_v1  ;;  %s1581_s18 = scalar_lea.vmem [#allocation12], %s1551_s26  ;;  %s1585_s19 = scalar_lea.vmem [#allocation9], %s1551_s26 }
  0x3c   : > { %502 = vmatpush.msra.mxu0 %v1406_v0  ;;  %526 = vmatpush.msra.mxu1 %v1406_v0  ;;  %482 = vst [vmem:[%s1581_s18] sm:$0x1] %v1407_v1  ;;  %s1589_s20 = scalar_lea.vmem [#allocation14], %s1551_s26  ;;  %s743_s9 = scalar_lea.hbm %s1760_s6, %s1396_s27 }
  0x3d   : > { %550 = vmatpush.msra.mxu2 %v1406_v0  ;;  %480 = vst [vmem:[%s1585_s19] sm:$0x1] %v1407_v1  ;;  %s701_s28 = scalar_lea.hbm %s1757_s3, %s1396_s27  ;;  %s1605_s17 = sshll.u32 %s715_s23, 4  ;;  %s720_s17 = int_to_ptr.hbm [resolvable:$true] %s1605_s17 }
  0x3e   : > { %503 = vmatpush.msra.mxu0 %v1406_v0  ;;  %527 = vmatpush.msra.mxu1 %v1406_v0  ;;  %483 = vst [vmem:[%s1589_s20] sm:$0x1] %v1407_v1  ;;  %s745_s29 = sshll.u32 %s1581_s18, 4  ;;  %s703_s15 = sshll.u32 %s1577_s13, 4  ;;  %s1614_s29 = int_to_ptr.vmem [resolvable:$true] %s745_s29  ;;  %s704_s15 = int_to_ptr.vmem [resolvable:$true] %s703_s15 }
  0x3f   : > { %551 = vmatpush.msra.mxu2 %v1406_v0  ;;  %s1612_s30 = sshll.u32 %s701_s28, 4  ;;  %s1616_s11 = sshll.u32 %s743_s9, 4  ;;  %s706_s30 = int_to_ptr.hbm [resolvable:$true] %s1612_s30 }
  0x40   : > { %504 = vmatpush.msra.mxu0 %v1406_v0  ;;  %528 = vmatpush.msra.mxu1 %v1406_v0  ;;  %1789 = sst [smem:[#allocation27_spill]] %s1616_s11  ;;  %s729_s10 = scalar_lea.hbm %s1759_s5, %s1396_s27 }
  0x41   : > { %552 = vmatpush.msra.mxu2 %v1406_v0  ;;  %1009 = vmatmul.msk.f32.vlgmr.msra.gmra.mxu0 %vm485_vm0, %v484_v2  ;;  %v584_v28 = vld [vmem:[%s1572_s16] sm:$0x1]  ;;  %s1627_s9 = sshll.u32 %s729_s10, 4  ;;  %s757_s28 = scalar_lea.hbm %s1761_s7, %s1396_s27  ;;  %s734_s9 = int_to_ptr.hbm [resolvable:$true] %s1627_s9 }
  0x42   : > { %1010 = vmatmul.msk.f32.vlgmr.msra.gmra.mxu1 %vm485_vm0, %v509_v3  ;;  %1011 = vmatmul.msk.f32.vlgmr.msra.gmra.mxu2 %vm485_vm0, %v533_v4  ;;  %v564_v34 = vld [vmem:[%s1577_s13] sm:$0x1]  ;;  %s676_s22 = scalar_lea.sflag [#allocation4], %s1551_s26  ;;  %s1212_s23 = sshra.s32 %s706_s30, 4  ;;  %s1213_s23 = int_to_ptr.hbm [resolvable:$true] %s1212_s23 }
  0x43   : > { %v594_v35 = vld [vmem:[%s1581_s18] sm:$0x1]  ;;  %s1214_s21 = scalar_lea.hbm %s1213_s23, 1  ;;  %s1218_s10 = scalar_lea.hbm %s1757_s3, 2 }
  0x44   : > { %v574_v47 = vld [vmem:[%s1585_s19] sm:$0x1]  ;;  %p1215_p4 = scmp.ne.s32.totalorder %s1213_s23, %s1214_s21  ;;  %p1219_p7 = scmp.lt.s32.totalorder %s1213_s23, %s1757_s3 }
  0x45   : > { %v604_v48 = vld [vmem:[%s1589_s20] sm:$0x1]  ;;  %p1220_p8 = scmp.lt.s32.totalorder %s1218_s10, %s1214_s21 }
  0x46   : > { %p1216_p5 = pnand %p1215_p4, %p1503_p9 }
  0x47   : > { %p1221_p10 = por %p1220_p8, %p1219_p7 }
  0x48   : > { %p1217_p6 = pneg %p1216_p5 }
  0x4a   : > { %p1222_p13 = pnand %p1221_p10, %p1217_p6 }
  0xbe   : > { %v506_v5 = vpop.f32.mrf.mxu0 }
  0xbf   : > { %v585_v6 = vmul.f32 %v506_v5, %v506_v5  ;;  %v530_v7 = vpop.f32.mrf.mxu1 }
  0xc0   : > { %v565_v8 = vmul.f32 %v530_v7, %v506_v5  ;;  %v595_v9 = vmul.f32 %v530_v7, %v530_v7 }
  0xc1   : > { %v586_v10 = vrot.slane %v585_v6, 4 }
  0xc2   : > { %v566_v11 = vrot.slane %v565_v8, 4  ;;  %v596_v12 = vrot.slane %v595_v9, 4 }
  0xc3   : > { %v587_v13 = vadd.f32 %v586_v10, %v585_v6 }
  0xc4   : > { %v567_v14 = vadd.f32 %v566_v11, %v565_v8  ;;  %v597_v15 = vadd.f32 %v596_v12, %v595_v9 }
  0xc5   : > { %v588_v16 = vrot.slane %v587_v13, 2  ;;  %v554_v17 = vpop.f32.mrf.mxu2 }
  0xc6   : > { %v568_v18 = vrot.slane %v567_v14, 2  ;;  %v598_v19 = vrot.slane %v597_v15, 2  ;;  %v575_v20 = vmul.f32 %v554_v17, %v506_v5  ;;  %v605_v21 = vmul.f32 %v554_v17, %v554_v17 }
  0xc7   : > { %v589_v22 = vadd.f32 %v588_v16, %v587_v13 }
  0xc8   : > { %v569_v23 = vadd.f32 %v568_v18, %v567_v14  ;;  %v599_v24 = vadd.f32 %v598_v19, %v597_v15  ;;  %v576_v25 = vrot.slane %v575_v20, 4  ;;  %v606_v26 = vrot.slane %v605_v21, 4 }
  0xc9   : > { %v590_v27 = vrot.slane %v589_v22, 1 }
  0xca   : > { %v570_v29 = vrot.slane %v569_v23, 1  ;;  %v600_v30 = vrot.slane %v599_v24, 1  ;;  %v577_v31 = vadd.f32 %v576_v25, %v575_v20  ;;  %v607_v32 = vadd.f32 %v606_v26, %v605_v21 }
  0xcb   : > { %v591_v33 = vadd.f32 %v590_v27, %v589_v22 }
  0xcc   : > { %v571_v36 = vadd.f32 %v570_v29, %v569_v23  ;;  %v601_v37 = vadd.f32 %v600_v30, %v599_v24  ;;  %v578_v38 = vrot.slane %v577_v31, 2  ;;  %v608_v39 = vrot.slane %v607_v32, 2 }
  0xcd   : > { %v592_v40 = vadd.f32 %v591_v33, %v584_v28 }
  0xce   : > { %v572_v41 = vadd.f32 %v571_v36, %v564_v34  ;;  %v602_v42 = vadd.f32 %v601_v37, %v594_v35  ;;  %v579_v43 = vadd.f32 %v578_v38, %v577_v31  ;;  %v609_v44 = vadd.f32 %v608_v39, %v607_v32 }
  0xcf   : > { %593 = vst [vmem:[%s1572_s16] sm:$0x1] %v592_v40 }
  0xd0   : > { %573 = vst [vmem:[%s1577_s13] sm:$0x1] %v572_v41  ;;  %v580_v45 = vrot.slane %v579_v43, 1  ;;  %v610_v46 = vrot.slane %v609_v44, 1 }
  0xd1   : > { %603 = vst [vmem:[%s1581_s18] sm:$0x1] %v602_v42 }
  0xd2   : > { %1225 = shalt.err (!%p1222_p13)
}
  0xd3   : > { %s1790_s26 = sld [smem:[#allocation27_spill]]  ;;  %v581_v49 = vadd.f32 %v580_v45, %v579_v43  ;;  %v611_v50 = vadd.f32 %v610_v46, %v609_v44  ;;  %s688_s18 = scalar_lea.sflag [#allocation13], %s1563_s24 }
  0xd4   : > { %1020 = dma.vmem_to_hbm [thread:$0]  (%p1503_p9), %s704_s15, 16, %s706_s30, %s676_s22  }
  0xd5   : > { %s1246_s11 = scalar_lea.hbm %s1760_s6, 2 }
  0xd9   : > { %s1791_s12 = int_to_ptr.hbm [resolvable:$true] %s1790_s26 }
  0xda   : > { %s1240_s8 = sshra.s32 %s1791_s12, 4  ;;  %s1241_s8 = int_to_ptr.hbm [resolvable:$true] %s1240_s8 }
  0xdb   : > { %s1242_s1 = scalar_lea.hbm %s1241_s8, 1  ;;  %p1247_p3 = scmp.lt.s32.totalorder %s1241_s8, %s1760_s6 }
  0xdc   : > { %p1243_p0 = scmp.ne.s32.totalorder %s1241_s8, %s1242_s1  ;;  %p1248_p4 = scmp.lt.s32.totalorder %s1246_s11, %s1242_s1 }
  0xde   : > { %p1244_p1 = pnand %p1243_p0, %p1503_p9  ;;  %p1249_p5 = por %p1248_p4, %p1247_p3 }
  0xe0   : > { %p1245_p2 = pneg %p1244_p1 }
  0xe2   : > { %p1250_p6 = pnand %p1249_p5, %p1245_p2 }
  0xe4   : > { %1253 = shalt.err (!%p1250_p6)
}
  0xe5   : > { %s1792_s15 = smov %s1791_s12  ;;  %s759_s30 = sshll.u32 %s1589_s20, 4  ;;  %v582_v51 = vadd.f32 %v581_v49, %v574_v47  ;;  %v612_v52 = vadd.f32 %v611_v50, %v604_v48  ;;  %s1682_s30 = int_to_ptr.vmem [resolvable:$true] %s759_s30 }
  0xe6   : > { %1023 = dma.vmem_to_hbm [thread:$0]  (%p1503_p9), %s1614_s29, 16, %s1792_s15, %s688_s18  }
  0xe7   : > { %s1671_s12 = sshll.u32 %s757_s28, 4  ;;  %s1793_s26 = sshll.u32 %s1585_s19, 4  ;;  %583 = vst [vmem:[%s1585_s19] sm:$0x1] %v582_v51  ;;  %s718_s26 = int_to_ptr.vmem [resolvable:$true] %s1793_s26  ;;  %s762_s12 = int_to_ptr.hbm [resolvable:$true] %s1671_s12 }
  0xe8   : > { %s1794_s8 = sshll.u32 %s1572_s16, 4  ;;  %613 = vst [vmem:[%s1589_s20] sm:$0x1] %v612_v52  ;;  %s680_s29 = scalar_lea.sflag [#allocation10], %s1563_s24  ;;  %s1678_s8 = int_to_ptr.vmem [resolvable:$true] %s1794_s8 }
  0xe9   : > { %s1268_s27 = sshra.s32 %s720_s17, 4  ;;  %s1274_s16 = scalar_lea.hbm %s1758_s4, 2  ;;  %s1269_s27 = int_to_ptr.hbm [resolvable:$true] %s1268_s27 }
  0xea   : > { %s1270_s28 = scalar_lea.hbm %s1269_s27, 1  ;;  %p1275_p13 = scmp.lt.s32.totalorder %s1269_s27, %s1758_s4 }
  0xeb   : > { %p1271_p7 = scmp.ne.s32.totalorder %s1269_s27, %s1270_s28  ;;  %p1276_p0 = scmp.lt.s32.totalorder %s1274_s16, %s1270_s28 }
  0xed   : > { %p1272_p8 = pnand %p1271_p7, %p1503_p9  ;;  %p1277_p1 = por %p1276_p0, %p1275_p13 }
  0xef   : > { %p1273_p10 = pneg %p1272_p8 }
  0xf1   : > { %p1278_p2 = pnand %p1277_p1, %p1273_p10 }
  0xf3   : > { %1281 = shalt.err (!%p1278_p2)
}
  0xf4   : > { %1021 = dma.vmem_to_hbm [thread:$0]  (%p1503_p9), %s718_s26, 16, %s720_s17, %s680_s29  }
  0xf5   : > { %s1296_s19 = sshra.s32 %s734_s9, 4  ;;  %s1302_s15 = scalar_lea.hbm %s1759_s5, 2  ;;  %s1297_s19 = int_to_ptr.hbm [resolvable:$true] %s1296_s19 }
  0xf6   : > { %s1298_s20 = scalar_lea.hbm %s1297_s19, 1  ;;  %p1303_p6 = scmp.lt.s32.totalorder %s1297_s19, %s1759_s5 }
  0xf7   : > { %p1299_p3 = scmp.ne.s32.totalorder %s1297_s19, %s1298_s20  ;;  %p1304_p7 = scmp.lt.s32.totalorder %s1302_s15, %s1298_s20 }
  0xf9   : > { %p1300_p4 = pnand %p1299_p3, %p1503_p9  ;;  %p1305_p8 = por %p1304_p7, %p1303_p6 }
  0xfb   : > { %p1301_p5 = pneg %p1300_p4 }
  0xfd   : > { %p1306_p10 = pnand %p1305_p8, %p1301_p5 }
  0xff   : > { %1309 = shalt.err (!%p1306_p10)
}
 0x100   : > { %1022 = dma.vmem_to_hbm [thread:$0]  (%p1503_p9), %s1678_s8, 16, %s734_s9, %s680_s29  }
 0x101   : > { %s1324_s17 = sshra.s32 %s762_s12, 4  ;;  %s1330_s1 = scalar_lea.hbm %s1761_s7, 2  ;;  %s1325_s17 = int_to_ptr.hbm [resolvable:$true] %s1324_s17 }
 0x102   : > { %s1326_s26 = scalar_lea.hbm %s1325_s17, 1  ;;  %p1331_p2 = scmp.lt.s32.totalorder %s1325_s17, %s1761_s7 }
 0x103   : > { %p1327_p13 = scmp.ne.s32.totalorder %s1325_s17, %s1326_s26  ;;  %p1332_p3 = scmp.lt.s32.totalorder %s1330_s1, %s1326_s26 }
 0x105   : > { %p1328_p0 = pnand %p1327_p13, %p1503_p9  ;;  %p1333_p4 = por %p1332_p3, %p1331_p2 }
 0x107   : > { %p1329_p1 = pneg %p1328_p0 }
 0x109   : > { %p1334_p5 = pnand %p1333_p4, %p1329_p1 }
 0x10b   : > { %1337 = shalt.err (!%p1334_p5)
}
 0x10c   : > { %1024 = dma.vmem_to_hbm [thread:$0]  (%p1503_p9), %s1682_s30, 16, %s762_s12, %s688_s18  }
 0x10d PF: > { %s1795_s9 = sld [smem:[#allocation20_spill]]  ;;  %p1041_p6 = pnand %p998_p12, %p1512_p11 }
 0x10e   : > { %s1797_s29 = sld [smem:[#allocation23_spill]] }
 0x10f   : > { %p1042_p7 = pneg %p1041_p6 }
 0x113   : > { %s773_s21 = sand.u32 1, %s1795_s9  }
 0x114   : > { %s774_s11 = scalar_lea.sflag [#allocation4], %s773_s21 }
 0x115   : > { %1371 = dma.done.wait (%p1042_p7), %s774_s11, 16  }
 0x116   : > { %1373 = vsyncadd (%p1042_p7), %s774_s11, 4294967280  ;;  %s1798_s14 = sadd.s32 4294967294, %s1797_s29  }
 0x117   : > { %s782_s19 = sand.u32 1, %s1798_s14  }
 0x118   : > { %s783_s24 = scalar_lea.sflag [#allocation10], %s782_s19 }
 0x119   : > { %1375 = dma.done.wait (%p1042_p7), %s783_s24, 32  }
 0x11a   : > { %1377 = vsyncadd (%p1042_p7), %s783_s24, 4294967264  ;;  %s801_s20 = scalar_lea.sflag [#allocation13], %s782_s19 }
 0x11b   : > { %1379 = dma.done.wait (%p1042_p7), %s801_s20, 32  }
 0x11c   : > { %1381 = vsyncadd (%p1042_p7), %s801_s20, 4294967264  ;;  %s33_s29 = sadd.s32 1, %s1797_s29   ;;  %s1799_s18 = sld [smem:[#allocation21_spill]] }
 0x11d   : > { %p30_p9 = scmp.ge.s32.totalorder %s33_s29, 4   ;;  %s1800_s26 = sld [smem:[#allocation25_spill]] }
 0x11e   : > { %s1801_s27 = sld [smem:[#allocation22_spill]]  ;;  %s1803_s24 = smov %s1388_s25 }
 0x11f   : > { %s1802_s28 = sld [smem:[#allocation24_spill]]  ;;  %32 = sbr.rel (!%p30_p9) target bundleno = 15 (0xf), region = 177 }
 0x122   : > { %s1804_s25 = smov %s1799_s18 }
 0x124   :  { %815 = vsyncpa [#allocation3], 1 }
 0x125   :  { %817 = vsyncpa [#allocation3 + $0x1], 1 }
 0x126   :  { %818 = vsyncpa [#allocation6], 1 }
 0x127   :  { %820 = vsyncpa [#allocation6 + $0x1], 1 }
 0x128   :  { %821 = vsyncpa [#allocation4], 1 }
 0x129   :  { %823 = vsyncpa [#allocation4 + $0x1], 1 }
 0x12a   :  { %824 = vsyncpa [#allocation10], 1 }
 0x12b   :  { %826 = vsyncpa [#allocation10 + $0x1], 1 }
 0x12c   :  { %827 = vsyncpa [#allocation13], 1 }
 0x12d   :  { %829 = vsyncpa [#allocation13 + $0x1], 1 }

</bundles_post_ra>
